<compile_context>
chip_gen: v7x
topology: tpu7x:2x2x1
jax: 0.10.0
libtpu: 0.0.40
codegen_flags: <defaults>
</compile_context>

<pallas_src>
import numpy as np
import jax
import jax.numpy as jnp
from jax import lax
from jax.experimental import pallas as pl
from jax.experimental.pallas import tpu as pltpu

NEG_SLOPE = 0.2     # GATConv default negative_slope
NEG_INF = -1e30


# --------------------------------- kernel ---------------------------------
def _gat_layer(h_in, mask, w, a_src, a_dst, bias):
    """Single-head GATConv (concat=True, heads=1) on a dense adjacency mask."""
    # Feature transform: the only "real" matmul input of the layer (MXU).
    h = jnp.dot(h_in, w, preferred_element_type=jnp.float32)             # [N, Fo]
    # Attention logits: VPU multiply + lane reduce (no width-1 MXU matvec).
    e_dst = jnp.sum(h * a_dst, axis=-1, keepdims=True)                   # [N, 1]
    # e_src is needed as a row [1, N]; keep dot_general only for this orientation.
    e_src = lax.dot_general(a_src, h, (((1,), (1,)), ((), ())),
                            preferred_element_type=jnp.float32)          # [1, N]
    # scores[i, j] = leaky_relu(e_dst[i] + e_src[j]) for edge j -> i
    s = e_dst + e_src                                                    # [N, N]
    s = jnp.where(s > 0, s, NEG_SLOPE * s)
    s = jnp.where(mask, s, NEG_INF)
    # Softmax over incoming neighbors j of each target i (masked entries underflow
    # to exactly 0 in the exp; self-loops guarantee denom > 0).
    m = jnp.max(s, axis=-1, keepdims=True)
    p = jnp.exp(s - m)
    denom = jnp.sum(p, axis=-1, keepdims=True)                           # [N, 1]
    # Aggregate unnormalized, then scale post-matmul (EUP reciprocal, N*Fo scale).
    agg = jnp.dot(p, h, preferred_element_type=jnp.float32)              # [N, Fo]
    return agg * pl.reciprocal(denom, approx=True) + bias


def graph_encoder_kernel(x_ref, adj_ref,
                         w1_ref, a1s_ref, a1d_ref, b1_ref,
                         w2_ref, a2s_ref, a2d_ref, b2_ref,
                         out_ref):
    # Mask computed once, reused by both layers.
    mask = adj_ref[...] > 0.0                                            # [N, N] bool
    h1 = _gat_layer(x_ref[...], mask,
                    w1_ref[...], a1s_ref[...], a1d_ref[...], b1_ref[...])
    h1 = jnp.maximum(h1, 0.0)                                            # F.relu
    h2 = _gat_layer(h1, mask,
                    w2_ref[...], a2s_ref[...], a2d_ref[...], b2_ref[...])
    # global_mean_pool(x, batch=None): mean over all nodes of this graph.
    n = h2.shape[0]
    out_ref[...] = jnp.sum(h2, axis=0, keepdims=True) * (1.0 / n)        # [1, FOp]


# --------------------------------- wrapper ---------------------------------
def _round_up(x, m):
    return ((x + m - 1) // m) * m


def _pad2(a, rows, cols):
    """Zero-pad the last two dims of `a` up to (rows, cols)."""
    pr = rows - a.shape[-2]
    pc = cols - a.shape[-1]
    if pr == 0 and pc == 0:
        return a
    return jnp.pad(a, [(0, 0)] * (a.ndim - 2) + [(0, pr), (0, pc)])


def graph_encoder(x, adj, params):
    """x: [B, N, F_in], adj: [B, N, N] dense adjacency with self-loops.
    Returns [B, out_dim]; row b is GraphEncoder.forward for graph b."""
    B, N, FI = x.shape
    H = params["w1"].shape[1]
    FO = params["w2"].shape[1]
    FIp, Hp, FOp = (_round_up(d, 128) for d in (FI, H, FO))

    # Zero-padding of feature dims is numerically exact (padded columns stay 0).
    x_p = _pad2(x, N, FIp)
    w1 = _pad2(params["w1"], FIp, Hp)
    a1s = _pad2(params["a1_src"], 1, Hp)
    a1d = _pad2(params["a1_dst"], 1, Hp)
    b1 = _pad2(params["b1"], 1, Hp)
    w2 = _pad2(params["w2"], Hp, FOp)
    a2s = _pad2(params["a2_src"], 1, FOp)
    a2d = _pad2(params["a2_dst"], 1, FOp)
    b2 = _pad2(params["b2"], 1, FOp)

    per_graph = lambda b: (b, 0, 0)       # one graph per grid step
    shared = lambda b: (0, 0)             # weights stay VMEM-resident

    out = pl.pallas_call(
        graph_encoder_kernel,
        out_shape=jax.ShapeDtypeStruct((B, 1, FOp), jnp.float32),
        grid=(B,),
        in_specs=[
            pl.BlockSpec((None, N, FIp), per_graph),   # x
            pl.BlockSpec((None, N, N), per_graph),     # adj
            pl.BlockSpec((FIp, Hp), shared),           # w1
            pl.BlockSpec((1, Hp), shared),             # a1_src (row)
            pl.BlockSpec((1, Hp), shared),             # a1_dst (row)
            pl.BlockSpec((1, Hp), shared),             # b1
            pl.BlockSpec((Hp, FOp), shared),           # w2
            pl.BlockSpec((1, FOp), shared),            # a2_src (row)
            pl.BlockSpec((1, FOp), shared),            # a2_dst (row)
            pl.BlockSpec((1, FOp), shared),            # b2
        ],
        out_specs=pl.BlockSpec((None, 1, FOp), per_graph),
        compiler_params=pltpu.CompilerParams(
            dimension_semantics=("parallel",)),
    )(x_p, adj, w1, a1s, a1d, b1, w2, a2s, a2d, b2)

    return out[:, 0, :FO]


# ----------------------------- plain-JAX reference -----------------------------
def _gat_layer_ref(h_in, adj, w, a_src, a_dst, b):
    h = h_in @ w
    e_src = (h * a_src).sum(-1)              # [N]
    e_dst = (h * a_dst).sum(-1)              # [N]
    s = e_dst[:, None] + e_src[None, :]
    s = jnp.where(s > 0, s, NEG_SLOPE * s)
    s = jnp.where(adj > 0, s, NEG_INF)
    alpha = jax.nn.softmax(s, axis=-1)
    alpha = jnp.where(adj > 0, alpha, 0.0)
    return alpha @ h + b


def graph_encoder_ref(x, adj, p):
    h1 = jnp.maximum(_gat_layer_ref(x, adj, p["w1"], p["a1_src"], p["a1_dst"], p["b1"]), 0.0)
    h2 = _gat_layer_ref(h1, adj, p["w2"], p["a2_src"], p["a2_dst"], p["b2"])
    return jnp.mean(h2, axis=0, keepdims=True)


# --------------------------------- setup / main ---------------------------------
def init_params(key, input_dim, hidden_dim, output_dim):
    ks = jax.random.split(key, 6)

    def glorot(k, shape):
        fan_in, fan_out = shape[0], shape[-1]
        lim = np.sqrt(6.0 / (fan_in + fan_out))
        return jax.random.uniform(k, shape, jnp.float32, -lim, lim)

    return {
        "w1": glorot(ks[0], (input_dim, hidden_dim)),
        "a1_src": glorot(ks[1], (1, hidden_dim)),
        "a1_dst": glorot(ks[2], (1, hidden_dim)),
        "b1": jnp.zeros((1, hidden_dim), jnp.float32),
        "w2": glorot(ks[3], (hidden_dim, output_dim)),
        "a2_src": glorot(ks[4], (1, output_dim)),
        "a2_dst": glorot(ks[5], (1, output_dim)),
        "b2": jnp.zeros((1, output_dim), jnp.float32),
    }


def build_dense_adj(edge_index, num_nodes):
    """edge_index: [2, E] int array (row 0 = source, row 1 = target)."""
    adj = np.zeros((num_nodes, num_nodes), dtype=np.float32)
    src, dst = edge_index
    adj[dst, src] = 1.0
    adj[np.arange(num_nodes), np.arange(num_nodes)] = 1.0   # add_self_loops=True
    return jnp.asarray(adj)


if __name__ == "__main__":
    B, N = 8, 16
    INPUT_DIM, HIDDEN_DIM, OUTPUT_DIM = 8, 32, 16

    key = jax.random.PRNGKey(0)
    k_x, k_p, k_e = jax.random.split(key, 3)

    x = jax.random.normal(k_x, (B, N, INPUT_DIM), jnp.float32)

    # Deterministic per-graph edge sets: bidirectional ring + shifted chords.
    adjs = []
    num_edges = 0
    for b in range(B):
        src = list(range(N)) + list(range(N)) + [(0 + b) % N, (3 + b) % N,
                                                 (5 + b) % N, (9 + b) % N, (12 + b) % N]
        dst = [(i + 1) % N for i in range(N)] + [(i - 1) % N for i in range(N)] + \
              [(7 + b) % N, (11 + b) % N, (2 + b) % N, (14 + b) % N, (4 + b) % N]
        edge_index = np.stack([np.array(src), np.array(dst)], axis=0)
        num_edges = edge_index.shape[1]
        adjs.append(build_dense_adj(edge_index, N))
    adj = jnp.stack(adjs, axis=0)                                   # [B, N, N]
    edge_attr = jax.random.normal(k_e, (num_edges, 4), jnp.float32)  # unused (see TODO)

    params = init_params(k_p, INPUT_DIM, HIDDEN_DIM, OUTPUT_DIM)

    out = graph_encoder(x, adj, params)
    out = jax.block_until_ready(out)

    ref = jax.vmap(lambda xb, ab: graph_encoder_ref(xb, ab, params))(x, adj)[:, 0, :]
    assert out.shape == (B, OUTPUT_DIM)
    np.testing.assert_allclose(np.asarray(out), np.asarray(ref), rtol=2e-3, atol=5e-4)

    print("KERNEL_OK")
</pallas_src>

<mosaic_0001>
module attributes {stable_mosaic.version = 11 : i64} {
  func.func @graph_encoder_kernel(%arg0: i32, %arg1: memref<1x16x128xf32, #tpu.memory_space<vmem>>, %arg2: memref<1x16x16xf32, #tpu.memory_space<vmem>>, %arg3: memref<128x128xf32, #tpu.memory_space<vmem>>, %arg4: memref<1x128xf32, #tpu.memory_space<vmem>>, %arg5: memref<1x128xf32, #tpu.memory_space<vmem>>, %arg6: memref<1x128xf32, #tpu.memory_space<vmem>>, %arg7: memref<128x128xf32, #tpu.memory_space<vmem>>, %arg8: memref<1x128xf32, #tpu.memory_space<vmem>>, %arg9: memref<1x128xf32, #tpu.memory_space<vmem>>, %arg10: memref<1x128xf32, #tpu.memory_space<vmem>>, %arg11: memref<1x1x128xf32, #tpu.memory_space<vmem>>) attributes {dimension_semantics = [#tpu.dimension_semantics<parallel>], iteration_bounds = array<i64: 8>, scalar_prefetch = 0 : i64, scratch_operands = 0 : i64, tpu.core_type = #tpu.core_type<tc>, window_params = [{transform_indices = @transform_0, window_bounds = array<i64: 1, 16, 128>}, {transform_indices = @transform_1, window_bounds = array<i64: 1, 16, 16>}, {pipeline_mode = #tpu.pipeline_mode<synchronous>, transform_indices = @transform_2, window_bounds = array<i64: 128, 128>}, {pipeline_mode = #tpu.pipeline_mode<synchronous>, transform_indices = @transform_3, window_bounds = array<i64: 1, 128>}, {pipeline_mode = #tpu.pipeline_mode<synchronous>, transform_indices = @transform_4, window_bounds = array<i64: 1, 128>}, {pipeline_mode = #tpu.pipeline_mode<synchronous>, transform_indices = @transform_5, window_bounds = array<i64: 1, 128>}, {pipeline_mode = #tpu.pipeline_mode<synchronous>, transform_indices = @transform_6, window_bounds = array<i64: 128, 128>}, {pipeline_mode = #tpu.pipeline_mode<synchronous>, transform_indices = @transform_7, window_bounds = array<i64: 1, 128>}, {pipeline_mode = #tpu.pipeline_mode<synchronous>, transform_indices = @transform_8, window_bounds = array<i64: 1, 128>}, {pipeline_mode = #tpu.pipeline_mode<synchronous>, transform_indices = @transform_9, window_bounds = array<i64: 1, 128>}, {transform_indices = @transform_10, window_bounds = array<i64: 1, 1, 128>}]} {
    %c0 = arith.constant 0 : index
    %c0_0 = arith.constant 0 : index
    %c0_1 = arith.constant 0 : index
    %0 = vector.load %arg2[%c0, %c0_0, %c0_1] : memref<1x16x16xf32, #tpu.memory_space<vmem>>, vector<1x16x16xf32>
    %1 = vector.shape_cast %0 : vector<1x16x16xf32> to vector<16x16xf32>
    %cst = arith.constant 0.000000e+00 : f32
    %2 = vector.broadcast %cst : f32 to vector<16x16xf32>
    %3 = arith.cmpf ogt, %1, %2 : vector<16x16xf32>
    %c0_2 = arith.constant 0 : index
    %c0_3 = arith.constant 0 : index
    %c0_4 = arith.constant 0 : index
    %4 = vector.load %arg1[%c0_2, %c0_3, %c0_4] : memref<1x16x128xf32, #tpu.memory_space<vmem>>, vector<1x16x128xf32>
    %5 = vector.shape_cast %4 : vector<1x16x128xf32> to vector<16x128xf32>
    %c0_5 = arith.constant 0 : index
    %c0_6 = arith.constant 0 : index
    %6 = vector.load %arg3[%c0_5, %c0_6] : memref<128x128xf32, #tpu.memory_space<vmem>>, vector<128x128xf32>
    %c0_7 = arith.constant 0 : index
    %c0_8 = arith.constant 0 : index
    %7 = vector.load %arg4[%c0_7, %c0_8] : memref<1x128xf32, #tpu.memory_space<vmem>>, vector<1x128xf32>
    %c0_9 = arith.constant 0 : index
    %c0_10 = arith.constant 0 : index
    %8 = vector.load %arg5[%c0_9, %c0_10] : memref<1x128xf32, #tpu.memory_space<vmem>>, vector<1x128xf32>
    %c0_11 = arith.constant 0 : index
    %c0_12 = arith.constant 0 : index
    %9 = vector.load %arg6[%c0_11, %c0_12] : memref<1x128xf32, #tpu.memory_space<vmem>>, vector<1x128xf32>
    %cst_13 = arith.constant dense<0.000000e+00> : vector<16x128xf32>
    %10 = tpu.matmul %5, %6, %cst_13 {dimension_numbers = #tpu.dot_dimension_numbers<[1], [0], [0], [1], [0, 0, 1, 1], [], []>} : vector<16x128xf32>, vector<128x128xf32>, vector<16x128xf32> -> vector<16x128xf32>
    %11 = vector.broadcast %8 : vector<1x128xf32> to vector<16x128xf32>
    %12 = arith.mulf %10, %11 : vector<16x128xf32>
    %cst_14 = arith.constant dense<0.000000e+00> : vector<16xf32>
    %13 = vector.multi_reduction <add>, %12, %cst_14 [1] : vector<16x128xf32> to vector<16xf32>
    %14 = vector.shape_cast %13 : vector<16xf32> to vector<16x1xf32>
    %cst_15 = arith.constant dense<0.000000e+00> : vector<1x16xf32>
    %15 = tpu.matmul %7, %10, %cst_15 {dimension_numbers = #tpu.dot_dimension_numbers<[1], [1], [0], [0], [0, 0, 1, 0], [], []>} : vector<1x128xf32>, vector<16x128xf32>, vector<1x16xf32> -> vector<1x16xf32>
    %16 = vector.broadcast %14 : vector<16x1xf32> to vector<16x16xf32>
    %17 = vector.broadcast %15 : vector<1x16xf32> to vector<16x16xf32>
    %18 = arith.addf %16, %17 : vector<16x16xf32>
    %cst_16 = arith.constant 0.000000e+00 : f32
    %19 = vector.broadcast %cst_16 : f32 to vector<16x16xf32>
    %20 = arith.cmpf ogt, %18, %19 : vector<16x16xf32>
    %cst_17 = arith.constant 2.000000e-01 : f32
    %21 = vector.broadcast %cst_17 : f32 to vector<16x16xf32>
    %22 = arith.mulf %21, %18 : vector<16x16xf32>
    %23 = arith.select %20, %18, %22 : vector<16x16xi1>, vector<16x16xf32>
    %cst_18 = arith.constant -1.000000e+30 : f32
    %24 = vector.broadcast %cst_18 : f32 to vector<16x16xf32>
    %25 = arith.select %3, %23, %24 : vector<16x16xi1>, vector<16x16xf32>
    %cst_19 = arith.constant dense<0xFF800000> : vector<16xf32>
    %26 = vector.multi_reduction <maximumf>, %25, %cst_19 [1] : vector<16x16xf32> to vector<16xf32>
    %27 = vector.shape_cast %26 : vector<16xf32> to vector<16x1xf32>
    %28 = vector.broadcast %27 : vector<16x1xf32> to vector<16x16xf32>
    %29 = arith.subf %25, %28 : vector<16x16xf32>
    %30 = math.exp %29 : vector<16x16xf32>
    %cst_20 = arith.constant dense<0.000000e+00> : vector<16xf32>
    %31 = vector.multi_reduction <add>, %30, %cst_20 [1] : vector<16x16xf32> to vector<16xf32>
    %32 = vector.shape_cast %31 : vector<16xf32> to vector<16x1xf32>
    %cst_21 = arith.constant dense<0.000000e+00> : vector<16x128xf32>
    %33 = tpu.matmul %30, %10, %cst_21 {dimension_numbers = #tpu.dot_dimension_numbers<[1], [0], [0], [1], [0, 0, 1, 1], [], []>} : vector<16x16xf32>, vector<16x128xf32>, vector<16x128xf32> -> vector<16x128xf32>
    %34 = tpu.reciprocal %32 {approx = true} : vector<16x1xf32> -> vector<16x1xf32>
    %35 = vector.broadcast %34 : vector<16x1xf32> to vector<16x128xf32>
    %36 = arith.mulf %33, %35 : vector<16x128xf32>
    %37 = vector.broadcast %9 : vector<1x128xf32> to vector<16x128xf32>
    %38 = arith.addf %36, %37 : vector<16x128xf32>
    %cst_22 = arith.constant 0.000000e+00 : f32
    %39 = vector.broadcast %cst_22 : f32 to vector<16x128xf32>
    %40 = arith.maximumf %38, %39 : vector<16x128xf32>
    %c0_23 = arith.constant 0 : index
    %c0_24 = arith.constant 0 : index
    %41 = vector.load %arg7[%c0_23, %c0_24] : memref<128x128xf32, #tpu.memory_space<vmem>>, vector<128x128xf32>
    %c0_25 = arith.constant 0 : index
    %c0_26 = arith.constant 0 : index
    %42 = vector.load %arg8[%c0_25, %c0_26] : memref<1x128xf32, #tpu.memory_space<vmem>>, vector<1x128xf32>
    %c0_27 = arith.constant 0 : index
    %c0_28 = arith.constant 0 : index
    %43 = vector.load %arg9[%c0_27, %c0_28] : memref<1x128xf32, #tpu.memory_space<vmem>>, vector<1x128xf32>
    %c0_29 = arith.constant 0 : index
    %c0_30 = arith.constant 0 : index
    %44 = vector.load %arg10[%c0_29, %c0_30] : memref<1x128xf32, #tpu.memory_space<vmem>>, vector<1x128xf32>
    %cst_31 = arith.constant dense<0.000000e+00> : vector<16x128xf32>
    %45 = tpu.matmul %40, %41, %cst_31 {dimension_numbers = #tpu.dot_dimension_numbers<[1], [0], [0], [1], [0, 0, 1, 1], [], []>} : vector<16x128xf32>, vector<128x128xf32>, vector<16x128xf32> -> vector<16x128xf32>
    %46 = vector.broadcast %43 : vector<1x128xf32> to vector<16x128xf32>
    %47 = arith.mulf %45, %46 : vector<16x128xf32>
    %cst_32 = arith.constant dense<0.000000e+00> : vector<16xf32>
    %48 = vector.multi_reduction <add>, %47, %cst_32 [1] : vector<16x128xf32> to vector<16xf32>
    %49 = vector.shape_cast %48 : vector<16xf32> to vector<16x1xf32>
    %cst_33 = arith.constant dense<0.000000e+00> : vector<1x16xf32>
    %50 = tpu.matmul %42, %45, %cst_33 {dimension_numbers = #tpu.dot_dimension_numbers<[1], [1], [0], [0], [0, 0, 1, 0], [], []>} : vector<1x128xf32>, vector<16x128xf32>, vector<1x16xf32> -> vector<1x16xf32>
    %51 = vector.broadcast %49 : vector<16x1xf32> to vector<16x16xf32>
    %52 = vector.broadcast %50 : vector<1x16xf32> to vector<16x16xf32>
    %53 = arith.addf %51, %52 : vector<16x16xf32>
    %cst_34 = arith.constant 0.000000e+00 : f32
    %54 = vector.broadcast %cst_34 : f32 to vector<16x16xf32>
    %55 = arith.cmpf ogt, %53, %54 : vector<16x16xf32>
    %cst_35 = arith.constant 2.000000e-01 : f32
    %56 = vector.broadcast %cst_35 : f32 to vector<16x16xf32>
    %57 = arith.mulf %56, %53 : vector<16x16xf32>
    %58 = arith.select %55, %53, %57 : vector<16x16xi1>, vector<16x16xf32>
    %cst_36 = arith.constant -1.000000e+30 : f32
    %59 = vector.broadcast %cst_36 : f32 to vector<16x16xf32>
    %60 = arith.select %3, %58, %59 : vector<16x16xi1>, vector<16x16xf32>
    %cst_37 = arith.constant dense<0xFF800000> : vector<16xf32>
    %61 = vector.multi_reduction <maximumf>, %60, %cst_37 [1] : vector<16x16xf32> to vector<16xf32>
    %62 = vector.shape_cast %61 : vector<16xf32> to vector<16x1xf32>
    %63 = vector.broadcast %62 : vector<16x1xf32> to vector<16x16xf32>
    %64 = arith.subf %60, %63 : vector<16x16xf32>
    %65 = math.exp %64 : vector<16x16xf32>
    %cst_38 = arith.constant dense<0.000000e+00> : vector<16xf32>
    %66 = vector.multi_reduction <add>, %65, %cst_38 [1] : vector<16x16xf32> to vector<16xf32>
    %67 = vector.shape_cast %66 : vector<16xf32> to vector<16x1xf32>
    %cst_39 = arith.constant dense<0.000000e+00> : vector<16x128xf32>
    %68 = tpu.matmul %65, %45, %cst_39 {dimension_numbers = #tpu.dot_dimension_numbers<[1], [0], [0], [1], [0, 0, 1, 1], [], []>} : vector<16x16xf32>, vector<16x128xf32>, vector<16x128xf32> -> vector<16x128xf32>
    %69 = tpu.reciprocal %67 {approx = true} : vector<16x1xf32> -> vector<16x1xf32>
    %70 = vector.broadcast %69 : vector<16x1xf32> to vector<16x128xf32>
    %71 = arith.mulf %68, %70 : vector<16x128xf32>
    %72 = vector.broadcast %44 : vector<1x128xf32> to vector<16x128xf32>
    %73 = arith.addf %71, %72 : vector<16x128xf32>
    %cst_40 = arith.constant dense<0.000000e+00> : vector<128xf32>
    %74 = vector.multi_reduction <add>, %73, %cst_40 [0] : vector<16x128xf32> to vector<128xf32>
    %75 = vector.shape_cast %74 : vector<128xf32> to vector<1x128xf32>
    %cst_41 = arith.constant 6.250000e-02 : f32
    %76 = vector.broadcast %cst_41 : f32 to vector<1x128xf32>
    %77 = arith.mulf %75, %76 : vector<1x128xf32>
    %c0_42 = arith.constant 0 : index
    %c0_43 = arith.constant 0 : index
    %c0_44 = arith.constant 0 : index
    %78 = vector.load %arg11[%c0_42, %c0_43, %c0_44] : memref<1x1x128xf32, #tpu.memory_space<vmem>>, vector<1x1x128xf32>
    %79 = vector.shape_cast %78 : vector<1x1x128xf32> to vector<1x128xf32>
    %80 = vector.shape_cast %77 : vector<1x128xf32> to vector<1x1x128xf32>
    tpu.vector_store %arg11[%c0_42, %c0_43, %c0_44], %80 {strides = array<i32>} : memref<1x1x128xf32, #tpu.memory_space<vmem>>, vector<1x1x128xf32>,
    return
  }
  func.func @transform_0(%arg0: i32) -> (i32, i32, i32) {
    %c0_i32 = arith.constant 0 : i32
    %c0_i32_0 = arith.constant 0 : i32
    %c0_i32_1 = arith.constant 0 : i32
    return %arg0, %c0_i32, %c0_i32_0 : i32, i32, i32
  }
  func.func @transform_1(%arg0: i32) -> (i32, i32, i32) {
    %c0_i32 = arith.constant 0 : i32
    %c0_i32_0 = arith.constant 0 : i32
    %c0_i32_1 = arith.constant 0 : i32
    return %arg0, %c0_i32, %c0_i32_0 : i32, i32, i32
  }
  func.func @transform_2(%arg0: i32) -> (i32, i32) {
    %c0_i32 = arith.constant 0 : i32
    %c0_i32_0 = arith.constant 0 : i32
    %c0_i32_1 = arith.constant 0 : i32
    return %c0_i32, %c0_i32_0 : i32, i32
  }
  func.func @transform_3(%arg0: i32) -> (i32, i32) {
    %c0_i32 = arith.constant 0 : i32
    %c0_i32_0 = arith.constant 0 : i32
    %c0_i32_1 = arith.constant 0 : i32
    return %c0_i32, %c0_i32_0 : i32, i32
  }
  func.func @transform_4(%arg0: i32) -> (i32, i32) {
    %c0_i32 = arith.constant 0 : i32
    %c0_i32_0 = arith.constant 0 : i32
    %c0_i32_1 = arith.constant 0 : i32
    return %c0_i32, %c0_i32_0 : i32, i32
  }
  func.func @transform_5(%arg0: i32) -> (i32, i32) {
    %c0_i32 = arith.constant 0 : i32
    %c0_i32_0 = arith.constant 0 : i32
    %c0_i32_1 = arith.constant 0 : i32
    return %c0_i32, %c0_i32_0 : i32, i32
  }
  func.func @transform_6(%arg0: i32) -> (i32, i32) {
    %c0_i32 = arith.constant 0 : i32
    %c0_i32_0 = arith.constant 0 : i32
    %c0_i32_1 = arith.constant 0 : i32
    return %c0_i32, %c0_i32_0 : i32, i32
  }
  func.func @transform_7(%arg0: i32) -> (i32, i32) {
    %c0_i32 = arith.constant 0 : i32
    %c0_i32_0 = arith.constant 0 : i32
    %c0_i32_1 = arith.constant 0 : i32
    return %c0_i32, %c0_i32_0 : i32, i32
  }
  func.func @transform_8(%arg0: i32) -> (i32, i32) {
    %c0_i32 = arith.constant 0 : i32
    %c0_i32_0 = arith.constant 0 : i32
    %c0_i32_1 = arith.constant 0 : i32
    return %c0_i32, %c0_i32_0 : i32, i32
  }
  func.func @transform_9(%arg0: i32) -> (i32, i32) {
    %c0_i32 = arith.constant 0 : i32
    %c0_i32_0 = arith.constant 0 : i32
    %c0_i32_1 = arith.constant 0 : i32
    return %c0_i32, %c0_i32_0 : i32, i32
  }
  func.func @transform_10(%arg0: i32) -> (i32, i32, i32) {
    %c0_i32 = arith.constant 0 : i32
    %c0_i32_0 = arith.constant 0 : i32
    %c0_i32_1 = arith.constant 0 : i32
    return %arg0, %c0_i32, %c0_i32_0 : i32, i32, i32
  }
}

</mosaic_0001>

<bundles_post_ra>
// kernel: tpu_custom_call.1
= control target key start
LH: loop header
LB: loop body
LE: loop exit
PB: predicated region body
PF: predicated region fallthrough
CT: control target
= control target key end

     0   :  { %s2137_s0 = inlined_call_operand.hbm [shape: f32[8,16,128], index: 0, kind: input, shape index: {}]   ;;  %s2138_s1 = inlined_call_operand.hbm [shape: f32[8,16,16], index: 1, kind: input, shape index: {}]   ;;  %s2139_s2 = inlined_call_operand.hbm [shape: f32[128,128], index: 2, kind: input, shape index: {}]   ;;  %s2140_s3 = inlined_call_operand.vmem [shape: f32[1,128], index: 3, kind: input, shape index: {}]   ;;  %s2141_s4 = inlined_call_operand.vmem [shape: f32[1,128], index: 4, kind: input, shape index: {}]   ;;  %s2142_s5 = inlined_call_operand.vmem [shape: f32[1,128], index: 5, kind: input, shape index: {}]   ;;  %s2143_s6 = inlined_call_operand.hbm [shape: f32[128,128], index: 6, kind: input, shape index: {}]   ;;  %s2144_s7 = inlined_call_operand.vmem [shape: f32[1,128], index: 7, kind: input, shape index: {}]   ;;  %s2145_s8 = inlined_call_operand.vmem [shape: f32[1,128], index: 8, kind: input, shape index: {}]   ;;  %s2146_s9 = inlined_call_operand.vmem [shape: f32[1,128], index: 9, kind: input, shape index: {}]   ;;  %s2147_s10 = inlined_call_operand.hbm [shape: f32[8,1,128], index: 10, kind: output, shape index: {}]  }
   0x1   :  { %2158 = sst [smem:[#allocation20_spill]] %s2137_s0 }
   0x2   :  { %2159 = sst [smem:[#allocation21_spill]] %s2139_s2 }
   0x3   :  { %2160 = sst [smem:[#allocation22_spill]] %s2143_s6 }
   0x4   :  { %15 = vsyncpa [#allocation3], 0 }
   0x5   :  { %17 = vsyncpa [#allocation3 + $0x1], 0 }
   0x6   :  { %18 = vsyncpa [#allocation6], 0 }
   0x7   :  { %20 = vsyncpa [#allocation6 + $0x1], 0 }
   0x8   :  { %21 = vsyncpa [#allocation9], 0 }
   0x9   :  { %22 = vsyncpa [#allocation4], 0 }
   0xa   :  { %24 = vsyncpa [#allocation4 + $0x1], 0  ;;  %s1796_s13 = smov 0   ;;  %s1798_s14 = smov 0  }
   0xb   :  { %s1800_s15 = smov 0   ;;  %s1802_s16 = smov 0  }
   0xc LB: > { %2161 = sst [smem:[#allocation16_spill]] %s1717_s13  ;;  %s1817_s17 = sadd.s32 4294967295, %s1729_s16   ;;  %s1729_s16 = sphi %s1802_s16, %s2190_s16   ;;  %s1725_s15 = sphi %s1800_s15, %s2187_s15   ;;  %s1721_s14 = sphi %s1798_s14, %s2189_s14   ;;  %s1717_s13 = sphi %s1796_s13, %s2188_s13  }
   0xd   : > { %2162 = sst [smem:[#allocation17_spill]] %s1725_s15  ;;  %s1187_s18 = sadd.s32 4294967294, %s1729_s16  }
   0xe   : > { %p50_p0 = scmp.ne.s32.totalorder %s1721_s14, %s1717_s13  ;;  %p2148_p1 = scmp.eq.s32.totalorder %s1817_s17, 0 }
   0xf   : > { %p274_p3 = scmp.eq.s32.totalorder %s1187_s18, 7  ;;  %p1188_p5 = scmp.ge.s32.totalorder %s1729_s16, 1 }
  0x10   : > { %p1826_p4 = por %p2148_p1, %p50_p0  ;;  %p281_p7 = scmp.lt.s32.totalorder %s1729_s16, 9 }
  0x11   : > { %p1831_p6 = por %p274_p3, %p50_p0  ;;  %s1731_s22 = smov [#allocation7]  }
  0x12   : > { %s2163_s19 = scalar_select %p1826_p4, 1, 0 }
  0x13   : > { %s2164_s20 = scalar_select %p1831_p6, 1, 0 }
  0x14   : > { %p1836_p8 = pnand %p1188_p5, %p281_p7  ;;  %s293_s23 = sshll.u32 %s1731_s22, 4  ;;  %s294_s23 = int_to_ptr.vmem [resolvable:$true] %s293_s23 }
  0x15   : > { %2165 = sst [smem:[#allocation18_spill]] %s2164_s20  ;;  %s1732_s25 = smov [#allocation8]  }
  0x16   : > { %s2166_s21 = scalar_select %p1836_p8, 1, 0 }
  0x17   : > { %p1456_p9 = pneg %p1836_p8  ;;  %s315_s26 = sshll.u32 %s1732_s25, 4  ;;  %s1848_s26 = int_to_ptr.vmem [resolvable:$true] %s315_s26 }
  0x18   : > { %s2168_s2 = sld [smem:[#allocation21_spill]] }
  0x19   : > { %p1844_p10 = pnand %p1456_p9, %p2148_p1 }
  0x1b   : > { %p1537_p12 = pneg %p1844_p10 }
  0x1e   : > { %s1535_s29 = scalar_lea.hbm %s2168_s2, 2048 }
  0x1f   : > { %p1536_p11 = scmp.ne.s32.totalorder %s2168_s2, %s1535_s29  ;;  %p1542_p3 = scmp.lt.u32.totalorder %s1535_s29, %s2168_s2 }
  0x21   : > { %p1538_p13 = pnand %p1537_p12, %p1536_p11 }
  0x23   : > { %p1539_p0 = pneg %p1538_p13 }
  0x25   : > { %p1544_p5 = pnand %p1542_p3, %p1539_p0 }
  0x27   : > { %1547 = shalt.err (!%p1544_p5)
}
  0x28   : > { %s1548_s22 = scalar_lea.vmem %s294_s23, 2048  ;;  %p1556_p2 = scmp.lt.s32.totalorder %s294_s23, %s294_s23 }
  0x29   : > { %p1549_p7 = scmp.ne.s32.totalorder %s294_s23, %s1548_s22  ;;  %p1557_p6 = scmp.lt.s32.totalorder %s1548_s22, %s1548_s22 }
  0x2b   : > { %p1551_p9 = pnand %p1549_p7, %p1537_p12  ;;  %p1558_p4 = por %p1557_p6, %p1556_p2 }
  0x2d   : > { %p1552_p1 = pneg %p1551_p9 }
  0x2f   : > { %p1559_p8 = pnand %p1558_p4, %p1552_p1 }
  0x31   : > { %1562 = shalt.err (!%p1559_p8)
}
  0x32   : > { %s2153_s25 = smov 128   ;;  %s2155_s27 = smov 8  }
  0x33   : > { %1459 = dma.hbm_to_vmem [thread:$0]  (!%p1844_p10), %s2168_s2, 2048, %s294_s23, [#allocation6], %s2153_s25, %s2153_s25, %s2155_s27  }
  0x34   : > { %s2169_s6 = sld [smem:[#allocation22_spill]] }
  0x3a   : > { %s1563_s12 = scalar_lea.hbm %s2169_s6, 2048 }
  0x3b   : > { %p1564_p1 = scmp.ne.s32.totalorder %s2169_s6, %s1563_s12  ;;  %p1570_p6 = scmp.lt.u32.totalorder %s1563_s12, %s2169_s6 }
  0x3d   : > { %p1566_p2 = pnand %p1564_p1, %p1537_p12 }
  0x3f   : > { %p1567_p4 = pneg %p1566_p2 }
  0x41   : > { %p1572_p8 = pnand %p1570_p6, %p1567_p4 }
  0x43   : > { %1575 = shalt.err (!%p1572_p8)
}
  0x44   : > { %s1576_s23 = scalar_lea.vmem %s1848_s26, 2048  ;;  %p1584_p3 = scmp.lt.s32.totalorder %s1848_s26, %s1848_s26 }
  0x45   : > { %p1577_p11 = scmp.ne.s32.totalorder %s1848_s26, %s1576_s23  ;;  %p1585_p5 = scmp.lt.s32.totalorder %s1576_s23, %s1576_s23 }
  0x47   : > { %p1579_p13 = pnand %p1577_p11, %p1537_p12  ;;  %p1586_p7 = por %p1585_p5, %p1584_p3 }
  0x49   : > { %p1580_p0 = pneg %p1579_p13 }
  0x4b   : > { %p1587_p9 = pnand %p1586_p7, %p1580_p0 }
  0x4d   : > { %1590 = shalt.err (!%p1587_p9)
}
  0x4e   : > { %1462 = dma.hbm_to_vmem [thread:$0]  (!%p1844_p10), %s2169_s6, 2048, %s1848_s26, [#allocation9], %s2153_s25, %s2153_s25, %s2155_s27  }
  0x4f   : > { %s1904_s24 = sadd.s32 1, %s1729_s16   ;;  %s37_s28 = sadd.s32 1, %s1725_s15 }
  0x50   : > { %s34_s29 = ssub.s32 %s1729_s16, %s1904_s24  ;;  %p44_p12 = scmp.ne.s32.totalorder %s1725_s15, %s1721_s14 }
  0x51   : > { %p35_p1 = scmp.eq.s32.totalorder %s34_s29, 0  ;;  %p45_p2 = scmp.eq.s32.totalorder %s1729_s16, 0 }
  0x52   : > { %p2170_p4 = scmp.eq.s32.totalorder %s1817_s17, 7  ;;  %p1476_p8 = scmp.lt.s32.totalorder %s1729_s16, 8 }
  0x53   : > { %s1920_s11 = scalar_select %p35_p1, %s1725_s15, %s37_s28  }
  0x54   : > { %p1914_p6 = por %p2170_p4, %p44_p12  ;;  %p46_p11 = por %p45_p2, %p44_p12 }
  0x55   : > { %2172 = sst [smem:[#allocation19_spill]] %s1920_s11  ;;  %s338_s12 = sand.u32 1, %s1725_s15  }
  0x56   : > { %s1192_s18 = sshll.u32 %s338_s12, 4  ;;  %s1214_s26 = sshll.u32 %s1729_s16, 8 }
  0x57   : > { %s2173_s0 = sld [smem:[#allocation20_spill]]  ;;  %s342_s20 = scalar_lea.vmem [#allocation2], %s1192_s18 }
  0x58   : > { %s349_s29 = sshll.u32 %s342_s20, 4  ;;  %p1931_p10 = pnand %p1476_p8, %p46_p11  ;;  %s1929_s29 = int_to_ptr.vmem [resolvable:$true] %s349_s29 }
  0x59   : > { %s1938_s22 = scalar_lea.hbm %s2138_s1, %s1214_s26  ;;  %s363_s23 = scalar_lea.vmem [#allocation5], %s1192_s18 }
  0x5a   : > { %s1940_s2 = sshll.u32 %s363_s23, 4  ;;  %s1942_s6 = scalar_lea.sflag [#allocation3], %s338_s12  ;;  %s1974_s2 = int_to_ptr.vmem [resolvable:$true] %s1940_s2 }
  0x5b   : > { %p1593_p0 = pneg %p1931_p10 }
  0x5d   : > { %s1927_s13 = scalar_lea.hbm %s2173_s0, %s1214_s26  ;;  %s1596_s25 = scalar_lea.hbm %s2173_s0, 2048 }
  0x5e   : > { %s1591_s20 = scalar_lea.hbm %s1927_s13, 256  ;;  %p1597_p7 = scmp.lt.u32.totalorder %s1927_s13, %s2173_s0 }
  0x5f   : > { %p1592_p13 = scmp.ne.s32.totalorder %s1927_s13, %s1591_s20  ;;  %p1598_p9 = scmp.lt.u32.totalorder %s1596_s25, %s1591_s20 }
  0x60   : > { %p1600_p1 = scmp.lt.u32.totalorder %s1591_s20, %s1927_s13 }
  0x61   : > { %p1594_p3 = pnand %p1593_p0, %p1592_p13  ;;  %p1599_p12 = por %p1598_p9, %p1597_p7 }
  0x63   : > { %p1595_p5 = pneg %p1594_p3  ;;  %p1601_p2 = por %p1600_p1, %p1599_p12 }
  0x65   : > { %p1602_p4 = pnand %p1601_p2, %p1595_p5 }
  0x67   : > { %1605 = shalt.err (!%p1602_p4)
}
  0x68   : > { %s1606_s12 = scalar_lea.vmem %s1929_s29, 256  ;;  %s1735_s15 = smov [#allocation2]  }
  0x69   : > { %p1607_p8 = scmp.ne.s32.totalorder %s1929_s29, %s1606_s12  ;;  %s1611_s11 = sshll.u32 %s1735_s15, 4  ;;  %s1612_s11 = int_to_ptr.vmem [resolvable:$false] %s1611_s11 }
  0x6a   : > { %s1613_s18 = scalar_lea.vmem %s1612_s11, 512  ;;  %p1614_p3 = scmp.lt.s32.totalorder %s1929_s29, %s1612_s11 }
  0x6b   : > { %p1609_p11 = pnand %p1607_p8, %p1593_p0  ;;  %p1615_p7 = scmp.lt.s32.totalorder %s1613_s18, %s1606_s12 }
  0x6d   : > { %p1610_p13 = pneg %p1609_p11  ;;  %p1616_p9 = por %p1615_p7, %p1614_p3 }
  0x6f   : > { %p1617_p12 = pnand %p1616_p9, %p1610_p13 }
  0x71   : > { %1620 = shalt.err (!%p1617_p12)
}
  0x72   : > { %s2175_s23 = smov 8   ;;  %s2176_s20 = smov 128  }
  0x73   : > { %1466 = dma.hbm_to_vmem [thread:$0]  (!%p1931_p10), %s1927_s13, 256, %s1929_s29, %s1942_s6, %s2176_s20, %s2176_s20, %s2175_s23  }
  0x74   : > { %s359_s25 = sand.u32 1, %s1729_s16   ;;  %s1621_s26 = scalar_lea.hbm %s1938_s22, 256 }
  0x75   : > { %s1977_s27 = scalar_lea.sflag [#allocation6], %s359_s25  ;;  %p1622_p5 = scmp.ne.s32.totalorder %s1938_s22, %s1621_s26 }
  0x76   : > { %s1626_s11 = scalar_lea.hbm %s2138_s1, 2048  ;;  %p1627_p4 = scmp.lt.u32.totalorder %s1938_s22, %s2138_s1 }
  0x77   : > { %p1624_p1 = pnand %p1622_p5, %p1593_p0  ;;  %p1628_p8 = scmp.lt.u32.totalorder %s1626_s11, %s1621_s26 }
  0x78   : > { %p1630_p13 = scmp.lt.u32.totalorder %s1621_s26, %s1938_s22 }
  0x79   : > { %p1625_p2 = pneg %p1624_p1  ;;  %p1629_p11 = por %p1628_p8, %p1627_p4 }
  0x7b   : > { %p1631_p3 = por %p1630_p13, %p1629_p11 }
  0x7d   : > { %p1632_p7 = pnand %p1631_p3, %p1625_p2 }
  0x7f   : > { %1635 = shalt.err (!%p1632_p7)
}
  0x80   : > { %s1636_s6 = scalar_lea.vmem %s1974_s2, 256  ;;  %s1736_s13 = smov [#allocation5]  }
  0x81   : > { %p1637_p9 = scmp.ne.s32.totalorder %s1974_s2, %s1636_s6  ;;  %s1641_s29 = sshll.u32 %s1736_s13, 4  ;;  %s1642_s29 = int_to_ptr.vmem [resolvable:$false] %s1641_s29 }
  0x82   : > { %s1643_s0 = scalar_lea.vmem %s1642_s29, 512  ;;  %p1644_p1 = scmp.lt.s32.totalorder %s1974_s2, %s1642_s29 }
  0x83   : > { %p1639_p12 = pnand %p1637_p9, %p1593_p0  ;;  %p1645_p4 = scmp.lt.s32.totalorder %s1643_s0, %s1636_s6 }
  0x85   : > { %p1640_p5 = pneg %p1639_p12  ;;  %p1646_p8 = por %p1645_p4, %p1644_p1 }
  0x87   : > { %p1647_p11 = pnand %p1646_p8, %p1640_p5 }
  0x89   : > { %1650 = shalt.err (!%p1647_p11)
}
  0x8a   : > { %1469 = dma.hbm_to_vmem [thread:$0]  (!%p1931_p10), %s1938_s22, 256, %s1974_s2, %s1977_s27, %s2176_s20, %s2176_s20, %s2175_s23  }
  0x8b   : > { %p2177_p0 = scmp.ne.s32.totalorder %s2166_s21, 0 }
  0x8c   : > { %s2009_s25 = sand.u32 (!%p2177_p0), 1, %s1721_s14   ;;  %p2178_p2 = scmp.ne.s32.totalorder (!%p2177_p0), %s2163_s19, 0 }
  0x8d   : > { %382 = sbr.rel (%p2177_p0) target bundleno = 1866 (0x74a), region = 60  ;;  %s1199_s26 = sshll.u32 (!%p2177_p0), %s2009_s25, 4 }
  0x8e   : > { %s385_s12 = scalar_lea.sflag (!%p2177_p0), [#allocation3], %s2009_s25  ;;  %s2013_s15 = scalar_lea.vmem (!%p2177_p0), [#allocation2], %s1199_s26 }
  0x94   : > { %1696 = dma.done.wait (%p2178_p2), %s385_s12, 256  }
  0x95   : > { %1698 = vsyncadd (%p2178_p2), %s385_s12, 4294967040  ;;  %s393_s2 = sand.u32 1, %s1817_s17   ;;  %s2020_s28 = scalar_lea.vmem [#allocation5], %s1199_s26 }
  0x96   : > { %s394_s21 = scalar_lea.sflag [#allocation6], %s393_s2 }
  0x97   : > { %1700 = dma.done.wait (%p2178_p2), %s394_s21, 256  }
  0x98   : > { %1702 = vsyncadd (%p2178_p2), %s394_s21, 4294967040  ;;  %p2179_p10 = scmp.eq.s32.totalorder %s1817_s17, 0 }
  0x9a   : > { %1704 = dma.done.wait (%p2179_p10), [#allocation6], 2048   ;;  %p2180_p13 = pmov %p2179_p10 }
  0x9b   : > { %p2181_p3 = pmov %p2179_p10 }
  0x9c   : > { %1706 = vsyncadd (%p2180_p13), [#allocation6], 4294965248 }
  0x9d   : > { %1708 = dma.done.wait (%p2181_p3), [#allocation9], 2048   ;;  %p2182_p7 = pmov %p2181_p3 }
  0x9e   : > { %v452_v0 = vld [vmem:[#allocation7] sm:$0xff]  ;;  %v453_v1 = vld [vmem:[#allocation7 + $0x8] sm:$0xff]  ;;  %v454_v2 = vld [vmem:[#allocation7 + $0x10] sm:$0xff]  ;;  %v1737_v26 = vmov 0.0|0.0   ;;  %vm1738_vm0 = vmmov 0   ;;  %v1739_v27 = vmov 0.0   ;;  %v628_v35 = vlaneseq }
  0x9f   : > { %1710 = vsyncadd (%p2182_p7), [#allocation9], 4294965248  ;;  %v1364_v3 = vpack.c.bf16 %v453_v1, %v452_v0  ;;  %v455_v4 = vld [vmem:[#allocation7 + $0x18] sm:$0xff]  ;;  %v456_v6 = vld [vmem:[#allocation7 + $0x20] sm:$0xff]  ;;  %1396 = vmatprep.subr.bf16.mxu1 %v1737_v26  ;;  %1305 = vmatprep.mubr.msk.f32.mxu1 %vm1738_vm0, %v1739_v27  ;;  %vm642_vm4 = vcmask 130048   ;;  %s1211_s12 = sshll.u32 %s1817_s17, 4 }
  0xa0   : > { %v1368_v5 = vpack.c.bf16 %v455_v4, %v454_v2  ;;  %v457_v7 = vld [vmem:[#allocation7 + $0x28] sm:$0xff]  ;;  %v450_v9 = vld [vmem:[%s2013_s15] sm:$0xff]  ;;  %v459_v11 = vld [vmem:[#allocation7 + $0x38] sm:$0xff]  ;;  %v2042_v36 = vshrl.u32 %v628_v35, 7  ;;  %s2094_s19 = scalar_lea.hbm %s2147_s10, %s1211_s12  ;;  %s1067_s22 = scalar_lea.sflag [#allocation4], %s2009_s25 }
  0xa1   : > { %1365 = vmatprep.subr.bf16.mxu0 %v1364_v3  ;;  %v1372_v8 = vpack.c.bf16 %v457_v7, %v456_v6  ;;  %v458_v10 = vld [vmem:[#allocation7 + $0x30] sm:$0xff]  ;;  %1298 = vmatprep.mubr.f32.mxu0 %v450_v9  ;;  %v460_v13 = vld [vmem:[#allocation7 + $0x40] sm:$0xff]  ;;  %v461_v14 = vld [vmem:[#allocation7 + $0x48] sm:$0xff]  ;;  %s1740_s17 = smov [#allocation10]  }
  0xa2   : > { %1367 = vmatpush3.bf16.msra.mxu0 %v1364_v3  ;;  %v1376_v12 = vpack.c.bf16 %v459_v11, %v458_v10  ;;  %v1380_v15 = vpack.c.bf16 %v461_v14, %v460_v13  ;;  %v462_v16 = vld [vmem:[#allocation7 + $0x50] sm:$0xff]  ;;  %v463_v17 = vld [vmem:[#allocation7 + $0x58] sm:$0xff]  ;;  %v464_v19 = vld [vmem:[#allocation7 + $0x60] sm:$0xff]  ;;  %v630_v38 = vsub.s32 0, %v2042_v36  ;;  %s1655_s20 = sshll.u32 %s1740_s17, 4  ;;  %s1656_s20 = int_to_ptr.vmem [resolvable:$false] %s1655_s20 }
  0xa3   : > { %1369 = vmatprep.subr.bf16.mxu0 %v1368_v5  ;;  %v1384_v18 = vpack.c.bf16 %v463_v17, %v462_v16  ;;  %v465_v20 = vld [vmem:[#allocation7 + $0x68] sm:$0xff]  ;;  %v466_v22 = vld [vmem:[#allocation7 + $0x70] sm:$0xff]  ;;  %v467_v23 = vld [vmem:[#allocation7 + $0x78] sm:$0xff]  ;;  %s1657_s27 = scalar_lea.vmem %s1656_s20, 32 }
  0xa4   : > { %v1388_v21 = vpack.c.bf16 %v465_v20, %v464_v19  ;;  %v1392_v24 = vpack.c.bf16 %v467_v23, %v466_v22  ;;  %v451_v25 = vld [vmem:[%s2013_s15 + $0x8] sm:$0xff]  ;;  %v1203_v28 = vld [vmem:[%s2141_s4] ss:$0 sm:$0xff]  ;;  %v758_v3 = vld [vmem:[#allocation8 + $0x10] sm:$0xff]  ;;  %s445_s15 = scalar_lea.vmem [#allocation10], %s2009_s25 }
  0xa5   : > { %v468_v34 = vld [vmem:[%s2140_s3] sm:$0x1]  ;;  %v2052_v46 = vld [vmem:[%s2020_s28 + $0x8] sm:$0xff]  ;;  %v762_v10 = vld [vmem:[#allocation8 + $0x30] sm:$0xff]  ;;  %s1079_s2 = sshll.u32 %s445_s15, 4  ;;  %s2096_s2 = int_to_ptr.vmem [resolvable:$true] %s1079_s2 }
  0xa6   : > { %1371 = vmatpush3.bf16.msra.mxu0 %v1368_v5  ;;  %v2048_v42 = vld [vmem:[%s2020_s28] sm:$0xff]  ;;  %vm449_vm5 = vcmp.gt.f32.partialorder %v2052_v46, 0.0  ;;  %v757_v2 = vld [vmem:[#allocation8 + $0x8] sm:$0xff]  ;;  %v759_v5 = vld [vmem:[#allocation8 + $0x18] sm:$0xff]  ;;  %s1651_s23 = scalar_lea.vmem %s2096_s2, 16  ;;  %p1658_p1 = scmp.lt.s32.totalorder %s2096_s2, %s1656_s20 }
  0xa7   : > { %1373 = vmatprep.subr.bf16.mxu0 %v1372_v8  ;;  %vm448_vm1 = vcmp.gt.f32.partialorder %v2048_v42, 0.0  ;;  %v756_v1 = vld [vmem:[#allocation8] sm:$0xff]  ;;  %v1407_v6 = vpack.c.bf16 %v759_v5, %v758_v3  ;;  %v763_v11 = vld [vmem:[#allocation8 + $0x38] sm:$0xff]  ;;  %v765_v14 = vld [vmem:[#allocation8 + $0x48] sm:$0xff]  ;;  %p1652_p9 = scmp.ne.s32.totalorder %s2096_s2, %s1651_s23  ;;  %p1659_p4 = scmp.lt.s32.totalorder %s1657_s27, %s1651_s23 }
  0xa8   : > { %v1403_v4 = vpack.c.bf16 %v757_v2, %v756_v1  ;;  %v760_v7 = vld [vmem:[#allocation8 + $0x20] sm:$0xff]  ;;  %v766_v16 = vld [vmem:[#allocation8 + $0x50] sm:$0xff]  ;;  %v767_v17 = vld [vmem:[#allocation8 + $0x58] sm:$0xff] }
  0xa9   : > { %v764_v13 = vld [vmem:[#allocation8 + $0x40] sm:$0xff]  ;;  %v769_v20 = vld [vmem:[#allocation8 + $0x68] sm:$0xff]  ;;  %v770_v22 = vld [vmem:[#allocation8 + $0x70] sm:$0xff]  ;;  %p1653_p12 = pnand %p1652_p9, %p1914_p6  ;;  %p1660_p8 = por %p1659_p4, %p1658_p1 }
  0xaa   : > { %1375 = vmatpush3.bf16.msra.mxu0 %v1372_v8  ;;  %v761_v8 = vld [vmem:[#allocation8 + $0x28] sm:$0xff]  ;;  %v768_v19 = vld [vmem:[#allocation8 + $0x60] sm:$0xff]  ;;  %v771_v23 = vld [vmem:[#allocation8 + $0x78] sm:$0xff] }
  0xab   : > { %1377 = vmatprep.subr.bf16.mxu0 %v1376_v12  ;;  %v1411_v9 = vpack.c.bf16 %v761_v8, %v760_v7  ;;  %p1654_p5 = pneg %p1653_p12 }
  0xad   : > { %p1661_p11 = pnand %p1660_p8, %p1654_p5 }
  0xae   : > { %1379 = vmatpush3.bf16.msra.mxu0 %v1376_v12  ;;  %v1415_v12 = vpack.c.bf16 %v763_v11, %v762_v10 }
  0xaf   : > { %1381 = vmatprep.subr.bf16.mxu0 %v1380_v15 }
  0xb2   : > { %1383 = vmatpush3.bf16.msra.mxu0 %v1380_v15  ;;  %v1419_v15 = vpack.c.bf16 %v765_v14, %v764_v13 }
  0xb3   : > { %1385 = vmatprep.subr.bf16.mxu0 %v1384_v18 }
  0xb6   : > { %1387 = vmatpush3.bf16.msra.mxu0 %v1384_v18  ;;  %v1423_v18 = vpack.c.bf16 %v767_v17, %v766_v16 }
  0xb7   : > { %1389 = vmatprep.subr.bf16.mxu0 %v1388_v21 }
  0xba   : > { %1391 = vmatpush3.bf16.msra.mxu0 %v1388_v21  ;;  %v1427_v21 = vpack.c.bf16 %v769_v20, %v768_v19 }
  0xbb   : > { %1393 = vmatprep.subr.bf16.mxu0 %v1392_v24 }
  0xbe   : > { %1395 = vmatpush3.bf16.msra.mxu0 %v1392_v24  ;;  %v1431_v24 = vpack.c.bf16 %v771_v23, %v770_v22 }
  0xbf   : > { %1435 = vmatprep.subr.bf16.mxu0 %v1737_v26 }
  0xc1   : > { %1299 = vmatmul.mubr.f32.vlgmr.msra.gmra.mrb[0].mxu0 %v451_v25 }
  0xc2   : > { %1354 = vmatprep.mubr.msk.f32.mxu0 %vm1738_vm0, %v1739_v27 }
 0x194   : > { %v1300_v29 = vpop.f32.mrb[0].mxu0 }
 0x195   : > { %v537_v30 = vpop.f32.mrb[1].mxu0  ;;  %v553_v33 = vmul.f32 %v1300_v29, %v1203_v28 }
 0x196   : > { %v1397_v31 = vpack.c.bf16 %v1300_v29, %v537_v30  ;;  %v552_v32 = vmul.f32 %v1203_v28, %v537_v30  ;;  %v1206_v28 = vld [vmem:[%s2142_s5] ss:$0 sm:$0xff] }
 0x198   : > { %1398 = vmatpush3.bf16.xpose.msra.mxu1 %v1397_v31  ;;  %554 = vadd.xlane.f32.xlu0 %v552_v32 }
 0x199   : > { %1400 = vmatprep.subr.bf16.mxu1 %v1397_v31 }
 0x19c   : > { %556 = vadd.xlane.f32.xlu0 %v553_v33 }
 0x19f   : > { %1306 = vmatmul.mubr.f32.vlgmr.msra.gmra.mrb[0].mxu1 %v468_v34 }
 0x1a0   : > { %1402 = vmatpush3.bf16.msra.mxu1 %v1397_v31 }
 0x1a1   : > { %1404 = vmatprep.subr.bf16.mxu1 %v1403_v4 }
 0x225   : > { %v555_v37 = vpop.xlane.xlu0 %554 }
 0x229   : > { %v557_v43 = vpop.xlane.xlu0 %556 }
 0x272   : > { %v624_v39 = vpop.f32.mrb[0].mxu1 }
 0x273   : > { %v631_v40 = vrot.slane %v624_v39, %v630_v38  ;;  %v1307_v41 = vpop.f32.mrb[1].mxu1 }
 0x275   : > { %v632_v44 = vadd.f32 %v631_v40, %v555_v37  ;;  %v633_v45 = vadd.f32 %v631_v40, %v557_v43  ;;  %v1207_v40 = vld [vmem:[%s2145_s8] ss:$0 sm:$0xff] }
 0x277   : > { %vm634_vm2 = vcmp.gt.f32.partialorder %v632_v44, 0.0  ;;  %v636_v47 = vmul.f32 0.2, %v632_v44  ;;  %vm635_vm3 = vcmp.gt.f32.partialorder %v633_v45, 0.0  ;;  %v637_v48 = vmul.f32 0.2, %v633_v45 }
 0x279   : > { %v638_v49 = vsel %vm634_vm2, %v632_v44, %v636_v47  ;;  %v639_v50 = vsel %vm635_vm3, %v633_v45, %v637_v48  ;;  %v772_v48 = vld [vmem:[%s2144_s7] sm:$0x1] }
 0x27a   : > { %v640_v51 = vsel %vm448_vm1, %v638_v49, -1e+30  ;;  %v641_v53 = vsel %vm449_vm5, %v639_v50, -1e+30 }
 0x27b   : > { %v643_v52 = vsel %vm642_vm4, %v640_v51, -inf  ;;  %v646_v54 = vsel %vm642_vm4, %v641_v53, -inf }
 0x27c   : > { %644 = vmax.xlane.f32.xlu1 %v643_v52 }
 0x280   : > { %647 = vmax.xlane.f32.xlu1 %v646_v54 }
 0x309   : > { %v645_v55 = vpop.xlane.xlu1 %644 }
 0x30a   : > { %v649_v56 = vsub.f32 %v640_v51, %v645_v55 }
 0x30c   : > { %v651_v57 = vmul.f32 1.442695, %v649_v56 }
 0x30d   : > { %v648_v58 = vpop.xlane.xlu1 %647 }
 0x30e   : > { %1519 = vpow2.f32 %v651_v57  ;;  %v650_v59 = vsub.f32 %v641_v53, %v648_v58 }
 0x310   : > { %v653_v60 = vmul.f32 1.442695, %v650_v59 }
 0x312   : > { %1521 = vpow2.f32 %v653_v60 }
 0x318   : > { %v1520_v61 = vpop.eup %1519 }
 0x319   : > { %1312 = vmatprep.mubr.msk.f32.mxu1 %vm642_vm4, %v1520_v61  ;;  %v655_v62 = vsel %vm642_vm4, %v1520_v61, 0.0 }
 0x31a   : > { %656 = vadd.xlane.f32.xlu0 %v655_v62 }
 0x31c   : > { %v1522_v63 = vpop.eup %1521 }
 0x31d   : > { %1313 = vmatmul.mubr.msk.f32.vlgmr.msra.gmra.mrb[2].mxu1 %vm642_vm4, %v1522_v63  ;;  %v658_v0 = vsel %vm642_vm4, %v1522_v63, 0.0 }
 0x31e   : > { %659 = vadd.xlane.f32.xlu1 %v658_v0  ;;  %1406 = vmatpush3.bf16.msra.mxu1 %v1403_v4 }
 0x31f   : > { %1408 = vmatprep.subr.bf16.mxu1 %v1407_v6 }
 0x322   : > { %1410 = vmatpush3.bf16.msra.mxu1 %v1407_v6 }
 0x323   : > { %1412 = vmatprep.subr.bf16.mxu1 %v1411_v9 }
 0x326   : > { %1414 = vmatpush3.bf16.msra.mxu1 %v1411_v9  ;;  %v1210_v9 = vld [vmem:[%s2146_s9] ss:$0 sm:$0xff] }
 0x327   : > { %1416 = vmatprep.subr.bf16.mxu1 %v1415_v12 }
 0x32a   : > { %1418 = vmatpush3.bf16.msra.mxu1 %v1415_v12 }
 0x32b   : > { %1420 = vmatprep.subr.bf16.mxu1 %v1419_v15 }
 0x32e   : > { %1422 = vmatpush3.bf16.msra.mxu1 %v1419_v15 }
 0x32f   : > { %1424 = vmatprep.subr.bf16.mxu1 %v1423_v18 }
 0x332   : > { %1426 = vmatpush3.bf16.msra.mxu1 %v1423_v18 }
 0x333   : > { %1428 = vmatprep.subr.bf16.mxu1 %v1427_v21 }
 0x336   : > { %1430 = vmatpush3.bf16.msra.mxu1 %v1427_v21 }
 0x337   : > { %1432 = vmatprep.subr.bf16.mxu1 %v1431_v24 }
 0x33a   : > { %1434 = vmatpush3.bf16.msra.mxu1 %v1431_v24 }
 0x3a7   : > { %v657_v26 = vpop.xlane.xlu0 %656 }
 0x3ab   : > { %v660_v25 = vpop.xlane.xlu1 %659 }
 0x3ac   : > { %1523 = vrcp.f32 %v660_v25 }
 0x3ad   : > { %1525 = vrcp.f32 %v657_v26 }
 0x3b6   : > { %v1524_v27 = vpop.eup %1523 }
 0x3b7   : > { %v1526_v30 = vpop.eup %1525 }
 0x3f0   : > { %v1314_v29 = vpop.f32.mrb[2].mxu1 }
 0x3f1   : > { %v745_v31 = vmul.f32 %v1524_v27, %v1314_v29  ;;  %v733_v32 = vpop.f32.mrb[3].mxu1 }
 0x3f2   : > { %v744_v33 = vmul.f32 %v1526_v30, %v733_v32 }
 0x3f3   : > { %v753_v34 = vadd.f32 %v1206_v28, %v745_v31 }
 0x3f4   : > { %v752_v35 = vadd.f32 %v1206_v28, %v744_v33 }
 0x3f5   : > { %v755_v39 = vmax.f32 %v753_v34, 0.0 }
 0x3f6   : > { %v754_v37 = vmax.f32 %v752_v35, 0.0 }
 0x3f8   : > { %1347 = vmatprep.mubr.f32.mxu1 %v754_v37 }
 0x3f9   : > { %1348 = vmatmul.mubr.f32.vlgmr.msra.gmra.mrb[4].mxu1 %v755_v39 }
 0x4cc   : > { %v1349_v41 = vpop.f32.mrb[4].mxu1 }
 0x4cd   : > { %v841_v43 = vpop.f32.mrb[5].mxu1  ;;  %v857_v44 = vmul.f32 %v1349_v41, %v1207_v40 }
 0x4ce   : > { %v856_v45 = vmul.f32 %v1207_v40, %v841_v43  ;;  %v1436_v47 = vpack.c.bf16 %v1349_v41, %v841_v43 }
 0x4cf   : > { %860 = vadd.xlane.f32.xlu1 %v857_v44 }
 0x4d0   : > { %1437 = vmatpush3.bf16.xpose.msra.mxu0 %v1436_v47  ;;  %858 = vadd.xlane.f32.xlu0 %v856_v45 }
 0x4d1   : > { %1439 = vmatprep.subr.bf16.mxu0 %v1436_v47 }
 0x4d7   : > { %1355 = vmatmul.mubr.f32.vlgmr.msra.gmra.mrb[2].mxu0 %v772_v48 }
 0x4d8   : > { %1441 = vmatpush3.bf16.msra.mxu0 %v1436_v47 }
 0x55c   : > { %v861_v52 = vpop.xlane.xlu1 %860 }
 0x55d   : > { %v859_v53 = vpop.xlane.xlu0 %858 }
 0x5aa   : > { %v928_v49 = vpop.f32.mrb[2].mxu0 }
 0x5ab   : > { %v935_v50 = vrot.slane %v928_v49, %v630_v38  ;;  %v1356_v51 = vpop.f32.mrb[3].mxu0 }
 0x5ad   : > { %v936_v54 = vadd.f32 %v935_v50, %v859_v53  ;;  %v937_v55 = vadd.f32 %v935_v50, %v861_v52 }
 0x5af   : > { %vm939_vm6 = vcmp.gt.f32.partialorder %v937_v55, 0.0  ;;  %v941_v56 = vmul.f32 0.2, %v937_v55  ;;  %vm938_vm7 = vcmp.gt.f32.partialorder %v936_v54, 0.0  ;;  %v940_v57 = vmul.f32 0.2, %v936_v54 }
 0x5b1   : > { %v943_v58 = vsel %vm939_vm6, %v937_v55, %v941_v56  ;;  %v942_v59 = vsel %vm938_vm7, %v936_v54, %v940_v57 }
 0x5b2   : > { %v945_v60 = vsel %vm449_vm5, %v943_v58, -1e+30  ;;  %v944_v61 = vsel %vm448_vm1, %v942_v59, -1e+30 }
 0x5b3   : > { %v949_v36 = vsel %vm642_vm4, %v945_v60, -inf  ;;  %v946_v38 = vsel %vm642_vm4, %v944_v61, -inf }
 0x5b4   : > { %950 = vmax.xlane.f32.xlu1 %v949_v36  ;;  %947 = vmax.xlane.f32.xlu0 %v946_v38 }
 0x641   : > { %v951_v62 = vpop.xlane.xlu1 %950  ;;  %v948_v63 = vpop.xlane.xlu0 %947 }
 0x642   : > { %v953_v0 = vsub.f32 %v945_v60, %v951_v62  ;;  %v952_v1 = vsub.f32 %v944_v61, %v948_v63 }
 0x644   : > { %v956_v2 = vmul.f32 1.442695, %v953_v0  ;;  %v954_v3 = vmul.f32 1.442695, %v952_v1 }
 0x646   : > { %1527 = vpow2.f32 %v956_v2 }
 0x647   : > { %1529 = vpow2.f32 %v954_v3 }
 0x650   : > { %v1528_v4 = vpop.eup %1527 }
 0x651   : > { %v1530_v46 = vpop.eup %1529  ;;  %v961_v5 = vsel %vm642_vm4, %v1528_v4, 0.0 }
 0x652   : > { %1361 = vmatprep.mubr.msk.f32.mxu0 %vm642_vm4, %v1530_v46  ;;  %962 = vadd.xlane.f32.xlu1 %v961_v5  ;;  %v958_v42 = vsel %vm642_vm4, %v1530_v46, 0.0 }
 0x653   : > { %1362 = vmatmul.mubr.msk.f32.vlgmr.msra.gmra.mrb[4].mxu0 %vm642_vm4, %v1528_v4  ;;  %959 = vadd.xlane.f32.xlu0 %v958_v42 }
 0x6df   : > { %v963_v6 = vpop.xlane.xlu1 %962 }
 0x6e0   : > { %v960_v7 = vpop.xlane.xlu0 %959  ;;  %1531 = vrcp.f32 %v963_v6 }
 0x6e1   : > { %1533 = vrcp.f32 %v960_v7 }
 0x6ea   : > { %v1532_v8 = vpop.eup %1531 }
 0x6eb   : > { %v1534_v11 = vpop.eup %1533 }
 0x726   : > { %v1363_v10 = vpop.f32.mrb[4].mxu0 }
 0x727   : > { %v1048_v12 = vmul.f32 %v1532_v8, %v1363_v10  ;;  %v1036_v13 = vpop.f32.mrb[5].mxu0 }
 0x728   : > { %v1047_v14 = vmul.f32 %v1534_v11, %v1036_v13 }
 0x729   : > { %v1056_v15 = vadd.f32 %v1210_v9, %v1048_v12 }
 0x72a   : > { %v1055_v16 = vadd.f32 %v1210_v9, %v1047_v14 }
 0x72c   : > { %v1057_v17 = vadd.f32 %v1056_v15, %v1055_v16 }
 0x72e   : > { %v1058_v18 = vrot.slane %v1057_v17, 4 }
 0x730   : > { %v1059_v19 = vadd.f32 %v1058_v18, %v1057_v17 }
 0x732   : > { %v1060_v20 = vrot.slane %v1059_v19, 2 }
 0x734   : > { %v1061_v21 = vadd.f32 %v1060_v20, %v1059_v19 }
 0x736   : > { %v1062_v22 = vrot.slane %v1061_v21, 1 }
 0x738   : > { %v1063_v23 = vadd.f32 %v1062_v22, %v1061_v21 }
 0x73a   : > { %v1064_v24 = vmul.f32 0.0625, %v1063_v23 }
 0x73c   : > { %1065 = vst [vmem:[%s445_s15] sm:$0x1] %v1064_v24 }
 0x73d   : > { %1664 = shalt.err (!%p1661_p11)
}
 0x73e   : > { %s1665_s25 = scalar_lea.hbm %s2094_s19, 16  ;;  %s1669_s6 = scalar_lea.hbm %s2147_s10, 128 }
 0x73f   : > { %p1666_p0 = scmp.ne.s32.totalorder %s2094_s19, %s1665_s25  ;;  %p1670_p13 = scmp.lt.u32.totalorder %s2094_s19, %s2147_s10 }
 0x740   : > { %p1671_p3 = scmp.lt.u32.totalorder %s1669_s6, %s1665_s25  ;;  %p1673_p9 = scmp.lt.u32.totalorder %s1665_s25, %s2094_s19 }
 0x741   : > { %p1667_p2 = pnand %p1666_p0, %p1914_p6 }
 0x742   : > { %p1672_p7 = por %p1671_p3, %p1670_p13 }
 0x743   : > { %p1668_p10 = pneg %p1667_p2 }
 0x744   : > { %p1674_p12 = por %p1673_p9, %p1672_p7 }
 0x746   : > { %p1675_p5 = pnand %p1674_p12, %p1668_p10 }
 0x748   : > { %1678 = shalt.err (!%p1675_p5)
}
 0x749   : > { %1454 = dma.vmem_to_hbm [thread:$0]  (%p1914_p6), %s2096_s2, 16, %s2094_s19, %s1067_s22  }
 0x74a PF: > { %s2183_s0 = sld [smem:[#allocation16_spill]]  ;;  %s2184_s26 = sld [smem:[#allocation18_spill]] }
 0x74b   : > { %p1479_p1 = scmp.ge.s32.totalorder %s1729_s16, 2 }
 0x750   : > { %s1091_s12 = sand.u32 1, %s2183_s0   ;;  %p2185_p4 = scmp.ne.s32.totalorder %s2184_s26, 0 }
 0x751   : > { %s1092_s15 = scalar_lea.sflag [#allocation4], %s1091_s12 }
 0x752   : > { %p1471_p8 = pnand %p1479_p1, %p2185_p4 }
 0x754   : > { %1712 = dma.done.wait (!%p1471_p8), %s1092_s15, 16  }
 0x755   : > { %1714 = vsyncadd (!%p1471_p8), %s1092_s15, 4294967280  ;;  %s2186_s21 = sld [smem:[#allocation17_spill]]  ;;  %s2187_s15 = sld [smem:[#allocation19_spill]] }
 0x756   : > { %p27_p11 = scmp.ge.s32.totalorder %s1904_s24, 10   ;;  %s2188_s13 = smov %s1721_s14 }
 0x757   : > { %s2190_s16 = smov %s1904_s24 }
 0x758   :  { %29 = sbr.rel (!%p27_p11) target bundleno = 12 (0xc), region = 126 }
 0x75b   : > { %s2189_s14 = smov %s2186_s21 }
 0x75f   :  { %1096 = vsyncpa [#allocation3], 1 }
 0x760   :  { %1098 = vsyncpa [#allocation3 + $0x1], 1 }
 0x761   :  { %1099 = vsyncpa [#allocation6], 1 }
 0x762   :  { %1101 = vsyncpa [#allocation6 + $0x1], 1 }
 0x763   :  { %1102 = vsyncpa [#allocation9], 1 }
 0x764   :  { %1103 = vsyncpa [#allocation4], 1 }
 0x765   :  { %1105 = vsyncpa [#allocation4 + $0x1], 1 }

</bundles_post_ra>
